<compile_context>
chip_gen: v6e
topology: v6e:2x2x1
jax: 0.10.0
libtpu: 0.0.40
codegen_flags: <defaults>
</compile_context>

<pallas_src>
import jax
import jax.numpy as jnp
from jax.experimental import pallas as pl
from jax.experimental.pallas import tpu as pltpu


def _dma_copy_kernel(x_hbm, o_hbm, sem):
    # Pure identity: a single HBM->HBM DMA.  No VMEM staging, no grid steps,
    # no vector load/store traffic -- the copy runs at HBM bandwidth on
    # v5e / v6e / v7x and holds zero VMEM.
    cp = pltpu.make_async_copy(x_hbm, o_hbm, sem)
    cp.start()
    cp.wait()


def _identity_copy(x):
    """Identity copy of one tensor via a single HBM->HBM DMA (no grid)."""
    return pl.pallas_call(
        _dma_copy_kernel,
        out_shape=jax.ShapeDtypeStruct(x.shape, x.dtype),
        in_specs=[pl.BlockSpec(memory_space=pl.ANY)],   # raw HBM ref, no auto-DMA
        out_specs=pl.BlockSpec(memory_space=pl.ANY),    # raw HBM ref, written by our DMA
        scratch_shapes=[pltpu.SemaphoreType.DMA(())],
    )(x)


@jax.jit
def identity_copies(*inputs):
    """One minimal HBM->HBM DMA per tensor; no packing/padding/slicing plumbing."""
    return tuple(_identity_copy(x) for x in inputs)


class CategoryBranch:
    """JAX/Pallas equivalent of the (empty) PyTorch CategoryBranch module."""

    def __init__(self):
        # Reference __init__ defines no parameters.
        pass

    def forward(self, *inputs):
        # TODO(synk): reference forward body is `pass` (returns None); there is no
        # computation to translate, so no Pallas work is dispatched here.
        return None

    __call__ = forward


if __name__ == "__main__":
    key = jax.random.PRNGKey(0)
    k1, k2 = jax.random.split(key)
    x = jax.random.normal(k1, (2, 4, 16, 16), dtype=jnp.float32)  # NCHW activation
    y = jax.random.normal(k2, (2, 8, 32), dtype=jnp.float32)      # (batch, seq, hidden)

    # Semantics check: reference forward returns None for any inputs.
    branch = CategoryBranch()
    assert branch(x, y) is None

    # Exercise the representative Pallas kernel: per-tensor HBM->HBM DMA copies.
    xc, yc = identity_copies(x, y)
    xc = jax.block_until_ready(xc)
    yc = jax.block_until_ready(yc)

    assert xc.shape == x.shape and xc.dtype == x.dtype
    assert yc.shape == y.shape and yc.dtype == y.dtype
    assert bool(jnp.all(xc == x))
    assert bool(jnp.all(yc == y))

    print("KERNEL_OK")
</pallas_src>

<mosaic_0001>
module attributes {stable_mosaic.version = 11 : i64} {
  func.func @_dma_copy_kernel(%arg0: memref<2x4x16x16xf32, #tpu.memory_space<any>>, %arg1: memref<2x4x16x16xf32, #tpu.memory_space<any>>, %arg2: memref<!tpu.dma_semaphore, #tpu.memory_space<semaphore_mem>>) attributes {dimension_semantics = [], scalar_prefetch = 0 : i64, scratch_operands = 1 : i64, tpu.core_type = #tpu.core_type<tc>} {
    tpu.enqueue_dma source(%arg0 : memref<2x4x16x16xf32, #tpu.memory_space<any>>) target(%arg1 : memref<2x4x16x16xf32, #tpu.memory_space<any>>) target_semaphore(%arg2 : memref<!tpu.dma_semaphore, #tpu.memory_space<semaphore_mem>>)
    tpu.wait_dma2 semaphore(%arg2 : memref<!tpu.dma_semaphore, #tpu.memory_space<semaphore_mem>>) src(%arg0 : memref<2x4x16x16xf32, #tpu.memory_space<any>>) dst(%arg1 : memref<2x4x16x16xf32, #tpu.memory_space<any>>)
    return
  }
}

module attributes {stable_mosaic.version = 11 : i64} {
  func.func @_dma_copy_kernel(%arg0: memref<2x8x32xf32, #tpu.memory_space<any>>, %arg1: memref<2x8x32xf32, #tpu.memory_space<any>>, %arg2: memref<!tpu.dma_semaphore, #tpu.memory_space<semaphore_mem>>) attributes {dimension_semantics = [], scalar_prefetch = 0 : i64, scratch_operands = 1 : i64, tpu.core_type = #tpu.core_type<tc>} {
    tpu.enqueue_dma source(%arg0 : memref<2x8x32xf32, #tpu.memory_space<any>>) target(%arg1 : memref<2x8x32xf32, #tpu.memory_space<any>>) target_semaphore(%arg2 : memref<!tpu.dma_semaphore, #tpu.memory_space<semaphore_mem>>)
    tpu.wait_dma2 semaphore(%arg2 : memref<!tpu.dma_semaphore, #tpu.memory_space<semaphore_mem>>) src(%arg0 : memref<2x8x32xf32, #tpu.memory_space<any>>) dst(%arg1 : memref<2x8x32xf32, #tpu.memory_space<any>>)
    return
  }
}

</mosaic_0001>

<bundles_post_ra>
// kernel: identity_copies.3
= control target key start
LH: loop header
LB: loop body
LE: loop exit
PB: predicated region body
PF: predicated region fallthrough
CT: control target
= control target key end

     0   :  { %s29_s6 = smov [#allocation2]   ;;  %s30_s7 = smov 131072   ;;  %s48_s0 = inlined_call_operand.hbm [shape: f32[2,8,32], index: 0, kind: input, shape index: {}]   ;;  %s49_s1 = inlined_call_operand.hbm [shape: f32[2,8,32], index: 1, kind: output, shape index: {}]  }
   0x1   :  { %s31_s8 = smov 0  }
   0x2   :  { %12 = dma.general %s48_s0, 256, %s49_s1, %s29_s6, %s30_s7, [#allocation4], %s31_s8, 0  }
   0x3   :  { %27 = dma.done.wait [#allocation2], 256 }
   0x4   :  { %28 = vsyncadd [#allocation2], 4294967040 }
   0x5   :  { %17 = vsyncmov [#allocation2] }
   0x8   :  { %s18_s13 = vpop.sfrf %17 }
   0x9   :  { %p23_p0 = scmp.ne.s32.totalorder %s18_s13, 0 }
   0xb   :  { %22 = shalt.err (%p23_p0)  }

// kernel: identity_copies.2
= control target key start
LH: loop header
LB: loop body
LE: loop exit
PB: predicated region body
PF: predicated region fallthrough
CT: control target
= control target key end

     0   :  { %s30_s6 = smov [#allocation2]   ;;  %s31_s7 = smov 131072   ;;  %s49_s0 = inlined_call_operand.hbm [shape: f32[2,4,16,16], index: 0, kind: input, shape index: {}]   ;;  %s50_s1 = inlined_call_operand.hbm [shape: f32[2,4,16,16], index: 1, kind: output, shape index: {}]  }
   0x1   :  { %s32_s8 = smov 0  }
   0x2   :  { %12 = dma.general %s49_s0, 2048, %s50_s1, %s30_s6, %s31_s7, [#allocation4], %s32_s8, 0  }
   0x3   :  { %28 = dma.done.wait [#allocation2], 2048 }
   0x4   :  { %29 = vsyncadd [#allocation2], 4294965248 }
   0x5   :  { %18 = vsyncmov [#allocation2] }
   0x8   :  { %s19_s13 = vpop.sfrf %18 }
   0x9   :  { %p24_p0 = scmp.ne.s32.totalorder %s19_s13, 0 }
   0xb   :  { %23 = shalt.err (%p24_p0)  }

</bundles_post_ra>
